<compile_context>
chip_gen: v5e
topology: v5e:2x2
jax: 0.10.0
libtpu: 0.0.40
codegen_flags: <defaults>
</compile_context>

<pallas_src>
import numpy as np

import jax
import jax.numpy as jnp
from jax.experimental import pallas as pl
from jax.experimental.pallas import tpu as pltpu


def _expand_kernel(x_ref, g_ref, o_ref):
    """x_ref: (1, P, m_blk, W); g_ref: (P, W, P*W); o_ref: (1, m_blk, P*W)."""
    x = x_ref[0]
    if x.dtype != g_ref.dtype:           # static dtypes -> cast hoisted, done once
        x = x.astype(g_ref.dtype)
    # Batched one-hot matmul over the P = s*s source planes (single einsum,
    # f32 accumulation on the MXU), then the exact plane combine (each output
    # column gets exactly one nonzero contribution, the rest are exact zeros).
    y = jnp.einsum("pmw,pwj->pmj", x, g_ref[...],
                   preferred_element_type=jnp.float32)
    o_ref[0] = jnp.sum(y, axis=0).astype(o_ref.dtype)


def _gather_matrix(s, W, dtype):
    """G[p, w, j] = 1 iff source column w of plane p = s1*s+s2 lands at j = s1*W*s + w*s + s2."""
    P = s * s
    G = np.zeros((P, W, P * W), dtype=np.float32)
    w = np.arange(W)
    for s1 in range(s):
        for s2 in range(s):
            p = s1 * s + s2
            G[p, w, s1 * (W * s) + w * s + s2] = 1.0
    return jnp.asarray(G, dtype=dtype)


def _round_up(v, m):
    return ((v + m - 1) // m) * m


def _block_vmem_bytes(m_blk, P, W, in_dtype, compute_dtype, out_dtype):
    """Padded VMEM footprint of one grid step (double-buffered I/O + temporaries)."""
    lane = 128
    isz = jnp.dtype(in_dtype).itemsize
    csz = jnp.dtype(compute_dtype).itemsize
    osz = jnp.dtype(out_dtype).itemsize
    sub_in = max(8, 32 // isz)
    sub_c = max(8, 32 // csz)
    sub_out = max(8, 32 // osz)
    J = P * W
    in_blk = P * _round_up(m_blk, sub_in) * _round_up(W, lane) * isz
    g_blk = P * _round_up(W, sub_c) * _round_up(J, lane) * csz
    out_blk = _round_up(m_blk, sub_out) * _round_up(J, lane) * osz
    y_tmp = P * _round_up(m_blk, 8) * _round_up(J, lane) * 4        # f32 batched result
    x_cast = (P * _round_up(m_blk, sub_c) * _round_up(W, lane) * csz
              if compute_dtype != in_dtype else 0)
    return 2 * (in_blk + g_blk + out_blk) + y_tmp + x_cast


def _pick_m_block(m_total, sub, fits):
    """Largest divisor of m_total that is sublane-aligned (or the full dim) and fits VMEM."""
    divisors = [d for d in range(1, m_total + 1) if m_total % d == 0]
    aligned = [d for d in divisors if d == m_total or d % sub == 0]
    fitting = [d for d in aligned if fits(d)]
    if fitting:
        return max(fitting)
    return min(aligned)  # best effort; tiny shapes always land here safely


def expand(x, gain=2):
    """Pallas equivalent of Expand(gain).forward(x) for NCHW input."""
    N, C, H, W = x.shape
    s = gain
    assert C % (s * s) == 0, "C must be divisible by gain**2"
    Cp = C // (s * s)
    P = s * s
    J = P * W                 # = W*s * s : interleaved width for s output rows
    M_total = Cp * H

    # One-hot selection is exact in f32 and in bf16-with-f32-accumulate.
    compute_dtype = x.dtype if x.dtype in (jnp.float32, jnp.bfloat16) else jnp.float32

    # Generation-aware VMEM budget; the same number is handed to the compiler.
    try:
        physical = int(pltpu.get_tpu_info().vmem_capacity_bytes)
    except Exception:
        physical = 64 * 1024 * 1024          # conservative fallback (v7x-sized)
    budget = int(min(physical * 0.8, 100 * 1024 * 1024))

    isz = jnp.dtype(x.dtype).itemsize
    sub = max(8, 32 // isz)                  # sublane packing: 8 f32 / 16 bf16 / 32 int8

    def fits(d):
        return _block_vmem_bytes(d, P, W, x.dtype, compute_dtype, x.dtype) <= budget

    m_blk = _pick_m_block(M_total, sub, fits)
    # Keep >= 2 programs when possible so both v7x TensorCores get work.
    if N * (M_total // m_blk) < 2:
        smaller = [d for d in range(1, M_total) if M_total % d == 0
                   and d % sub == 0 and fits(d)]
        if smaller:
            m_blk = max(smaller)

    # Free row-major views: x_in[n, p, c*H + h, w] == x[n, p*Cp + c, h, w].
    x_in = x.reshape(N, P, M_total, W)
    G = _gather_matrix(s, W, compute_dtype)

    out_flat = pl.pallas_call(
        _expand_kernel,
        out_shape=jax.ShapeDtypeStruct((N, M_total, J), x.dtype),
        grid=(N, M_total // m_blk),
        in_specs=[
            pl.BlockSpec((1, P, m_blk, W), lambda n, m: (n, 0, m, 0)),
            pl.BlockSpec((P, W, J), lambda n, m: (0, 0, 0)),
        ],
        out_specs=pl.BlockSpec((1, m_blk, J), lambda n, m: (n, m, 0)),
        compiler_params=pltpu.CompilerParams(
            dimension_semantics=("parallel", "parallel"),
            vmem_limit_bytes=budget,
        ),
    )(x_in, G)

    # Free reshape: (N, Cp*H, s*s*W) -> (N, Cp, H*s, W*s).
    return out_flat.reshape(N, Cp, H * s, W * s)


def expand_ref(x, gain=2):
    """Pure-JAX reference mirroring the PyTorch forward exactly."""
    N, C, H, W = x.shape
    s = gain
    xr = x.reshape(N, s, s, C // s**2, H, W)
    xr = jnp.transpose(xr, (0, 3, 4, 1, 5, 2))
    return xr.reshape(N, C // s**2, H * s, W * s)


if __name__ == "__main__":
    key = jax.random.PRNGKey(0)
    N, C, H, W = 2, 8, 16, 16
    gain = 2
    x = jax.random.normal(key, (N, C, H, W), dtype=jnp.float32)

    y = expand(x, gain=gain)
    y = jax.block_until_ready(y)

    y_ref = expand_ref(x, gain=gain)
    assert y.shape == (N, C // gain**2, H * gain, W * gain)
    assert bool(jnp.array_equal(y, y_ref)), "mismatch vs reference"
    print("KERNEL_OK")
</pallas_src>

<mosaic_0001>
module attributes {stable_mosaic.version = 11 : i64} {
  func.func @_expand_kernel(%arg0: i32, %arg1: i32, %arg2: memref<1x4x32x16xf32, #tpu.memory_space<vmem>>, %arg3: memref<4x16x64xf32, #tpu.memory_space<vmem>>, %arg4: memref<1x32x64xf32, #tpu.memory_space<vmem>>) attributes {dimension_semantics = [#tpu.dimension_semantics<parallel>, #tpu.dimension_semantics<parallel>], iteration_bounds = array<i64: 2, 1>, scalar_prefetch = 0 : i64, scratch_operands = 0 : i64, tpu.core_type = #tpu.core_type<tc>, window_params = [{transform_indices = @transform_0, window_bounds = array<i64: 1, 4, 32, 16>}, {pipeline_mode = #tpu.pipeline_mode<synchronous>, transform_indices = @transform_1, window_bounds = array<i64: 4, 16, 64>}, {transform_indices = @transform_2, window_bounds = array<i64: 1, 32, 64>}]} {
    %c0 = arith.constant 0 : index
    %c0_0 = arith.constant 0 : index
    %c0_1 = arith.constant 0 : index
    %c0_2 = arith.constant 0 : index
    %0 = vector.load %arg2[%c0, %c0_0, %c0_1, %c0_2] : memref<1x4x32x16xf32, #tpu.memory_space<vmem>>, vector<1x4x32x16xf32>
    %1 = vector.shape_cast %0 : vector<1x4x32x16xf32> to vector<4x32x16xf32>
    %c0_3 = arith.constant 0 : index
    %c0_4 = arith.constant 0 : index
    %c0_5 = arith.constant 0 : index
    %2 = vector.load %arg3[%c0_3, %c0_4, %c0_5] : memref<4x16x64xf32, #tpu.memory_space<vmem>>, vector<4x16x64xf32>
    "tpu.trace_start"() <{level = 10 : i32, message = "pmw,pwj->pmj"}> : () -> ()
    %cst = arith.constant dense<0.000000e+00> : vector<4x32x64xf32>
    %3 = tpu.matmul %1, %2, %cst {dimension_numbers = #tpu.dot_dimension_numbers<[2], [1], [1], [2], [0, 0, 0, 1, 1, 2], [0], [0]>} : vector<4x32x16xf32>, vector<4x16x64xf32>, vector<4x32x64xf32> -> vector<4x32x64xf32>
    "tpu.trace_stop"() : () -> ()
    %cst_6 = arith.constant dense<0.000000e+00> : vector<32x64xf32>
    %4 = vector.multi_reduction <add>, %3, %cst_6 [0] : vector<4x32x64xf32> to vector<32x64xf32>
    %c0_7 = arith.constant 0 : index
    %c0_8 = arith.constant 0 : index
    %c0_9 = arith.constant 0 : index
    %5 = vector.load %arg4[%c0_7, %c0_8, %c0_9] : memref<1x32x64xf32, #tpu.memory_space<vmem>>, vector<1x32x64xf32>
    %6 = vector.shape_cast %5 : vector<1x32x64xf32> to vector<32x64xf32>
    %7 = vector.shape_cast %4 : vector<32x64xf32> to vector<1x32x64xf32>
    tpu.vector_store %arg4[%c0_7, %c0_8, %c0_9], %7 {strides = array<i32>} : memref<1x32x64xf32, #tpu.memory_space<vmem>>, vector<1x32x64xf32>,
    return
  }
  func.func @transform_0(%arg0: i32, %arg1: i32) -> (i32, i32, i32, i32) {
    %c0_i32 = arith.constant 0 : i32
    %c0_i32_0 = arith.constant 0 : i32
    %c0_i32_1 = arith.constant 0 : i32
    return %arg0, %c0_i32, %arg1, %c0_i32_0 : i32, i32, i32, i32
  }
  func.func @transform_1(%arg0: i32, %arg1: i32) -> (i32, i32, i32) {
    %c0_i32 = arith.constant 0 : i32
    %c0_i32_0 = arith.constant 0 : i32
    %c0_i32_1 = arith.constant 0 : i32
    %c0_i32_2 = arith.constant 0 : i32
    return %c0_i32, %c0_i32_0, %c0_i32_1 : i32, i32, i32
  }
  func.func @transform_2(%arg0: i32, %arg1: i32) -> (i32, i32, i32) {
    %c0_i32 = arith.constant 0 : i32
    %c0_i32_0 = arith.constant 0 : i32
    return %arg0, %arg1, %c0_i32 : i32, i32, i32
  }
}

</mosaic_0001>

<bundles_post_ra>
// kernel: tpu_custom_call.1
= control target key start
LH: loop header
LB: loop body
LE: loop exit
PB: predicated region body
PF: predicated region fallthrough
CT: control target
= control target key end

     0   :  { %7 = vsyncpa [#allocation3], 0  ;;  %s845_s0 = inlined_call_operand.vmem [shape: f32[2,4,32,16], index: 0, kind: input, shape index: {}]   ;;  %s846_s1 = inlined_call_operand.vmem [shape: f32[4,16,64], index: 1, kind: input, shape index: {}]   ;;  %s847_s2 = inlined_call_operand.hbm [shape: f32[2,32,64], index: 2, kind: output, shape index: {}]  }
   0x1   :  { %9 = vsyncpa [#allocation3 + $0x1], 0  ;;  %s677_s9 = smov 0   ;;  %s679_s10 = smov 0  }
   0x2   :  { %s681_s11 = smov 0   ;;  %s683_s12 = smov 0  }
   0x3   :  { %s685_s13 = smov 0   ;;  %s687_s14 = smov 0  }
   0x4 LB: > { %s492_s15 = sadd.s32 4294967295, %s658_s14   ;;  %s493_s16 = sadd.s32 4294967294, %s658_s14   ;;  %s658_s14 = sphi %s687_s14, %s15_s14   ;;  %s654_s13 = sphi %s685_s13, %s854_s13   ;;  %s650_s12 = sphi %s683_s12, %s853_s12   ;;  %s646_s11 = sphi %s681_s11, %s852_s11   ;;  %s642_s10 = sphi %s679_s10, %s851_s10   ;;  %s638_s9 = sphi %s677_s9, %s850_s9  }
   0x5   : > { %s27_s17 = sadd.s32 1, %s654_s13  ;;  %s85_s18 = sadd.s32 1, %s646_s11 }
   0x6   : > { %p29_p0 = scmp.ge.s32.totalorder %s27_s17, 2  ;;  %p95_p1 = scmp.ne.s32.totalorder %s646_s11, %s642_s10 }
   0x7   : > { %p96_p2 = scmp.eq.s32.totalorder %s492_s15, 1  ;;  %p101_p3 = scmp.ne.s32.totalorder %s642_s10, %s638_s9 }
   0x8   : > { %s856_s17 = smov (%p29_p0, %s27_s17), 0  ;;  %p102_p5 = scmp.eq.s32.totalorder %s493_s16, 1 }
   0x9   : > { %p717_p4 = por %p96_p2, %p95_p1  ;;  %s80_s20 = ssub.s32 %s654_s13, %s856_s17 }
   0xa   : > { %p496_p6 = scmp.ge.s32.totalorder %s658_s14, 1  ;;  %p83_p7 = scmp.eq.s32.totalorder %s80_s20, 0 }
   0xb   : > { %p724_p8 = por %p102_p5, %p101_p3  ;;  %p136_p9 = scmp.lt.s32.totalorder %s658_s14, 3 }
   0xc   : > { %s730_s22 = scalar_select %p83_p7, %s646_s11, %s85_s18  }
   0xd   : > { %p137_p10 = pnand %p496_p6, %p136_p9 }
   0xe   : > { %p163_p11 = scmp.lt.s32.totalorder (!%p137_p10), %s650_s12, 1  ;;  %s159_s26 = sand.u32 (!%p137_p10), 1, %s642_s10  }
   0xf   : > { %140 = sbr.rel (%p137_p10) target bundleno = 190 (0xbe), region = 28  ;;  %s497_s27 = sshll.u32 (!%p137_p10), %s159_s26, 5 }
  0x10   : > { %s786_s28 = scalar_lea.vmem (!%p137_p10), [#allocation2], %s497_s27  ;;  %s522_s29 = sshll.u32 (!%p137_p10), %s650_s12, 5 }
  0x11   : > { %s409_s4 = scalar_lea.hbm (!%p137_p10), %s847_s2, %s522_s29  ;;  %s410_s5 = sshll.u32 (!%p137_p10), %s786_s28, 4  ;;  %s411_s5 = int_to_ptr.vmem [resolvable:$true] %s410_s5 }
  0x12   : > { %s396_s6 = scalar_lea.sflag (!%p137_p10), [#allocation3], %s159_s26  ;;  %s600_s18 = scalar_lea.hbm (!%p137_p10), %s847_s2, 64 }
  0x14   : > { %v194_v0 = vld [vmem:[%s846_s1 + $0x28] sm:$0xff]  ;;  %v193_v1 = vld [vmem:[%s846_s1 + $0x20] sm:$0xff]  ;;  %v196_v2 = vld [vmem:[%s846_s1 + $0x38] sm:$0xff]  ;;  %s164_s7 = scalar_select %p163_p11, %s650_s12, 1  ;;  %vm197_vm0 = vcmask 130048   ;;  %vm362_vm1 = vcmask 523264  }
  0x15   : > { %306 = vmatpush.msra.mxu2 %v194_v0  ;;  %347 = vmatpush.msra.mxu3 %v196_v2  ;;  %v190_v3 = vld [vmem:[%s846_s1 + $0x8] sm:$0xff]  ;;  %v192_v4 = vld [vmem:[%s846_s1 + $0x18] sm:$0xff]  ;;  %v195_v5 = vld [vmem:[%s846_s1 + $0x30] sm:$0xff]  ;;  %s412_s12 = sshll.u32 %s409_s4, 4  ;;  %s413_s12 = int_to_ptr.hbm [resolvable:$true] %s412_s12 }
  0x16   : > { %224 = vmatpush.msra.mxu0 %v190_v3  ;;  %265 = vmatpush.msra.mxu1 %v192_v4  ;;  %v189_v6 = vld [vmem:[%s846_s1] sm:$0xff]  ;;  %v191_v7 = vld [vmem:[%s846_s1 + $0x10] sm:$0xff]  ;;  %s521_s20 = sshll.u32 %s164_s7, 7  ;;  %s594_s7 = sshra.s32 %s413_s12, 4  ;;  %s595_s7 = int_to_ptr.hbm [resolvable:$true] %s594_s7 }
  0x17   : > { %307 = vmatpush.msra.mxu2 %v193_v1  ;;  %348 = vmatpush.msra.mxu3 %v195_v5  ;;  %s170_s25 = scalar_lea.vmem %s845_s0, %s521_s20  ;;  %s596_s8 = scalar_lea.hbm %s595_s7, 32 }
  0x18   : > { %225 = vmatpush.msra.mxu0 %v189_v6  ;;  %266 = vmatpush.msra.mxu1 %v191_v7  ;;  %v181_v8 = vld [vmem:[%s170_s25 + $0x40] sm:$0xff]  ;;  %v182_v12 = vld [vmem:[%s170_s25 + $0x48] sm:$0xff]  ;;  %v183_v16 = vld [vmem:[%s170_s25 + $0x50] sm:$0xff]  ;;  %p597_p12 = scmp.ne.s32.totalorder %s595_s7, %s596_s8  ;;  %p601_p1 = scmp.lt.s32.totalorder %s595_s7, %s847_s2 }
  0x19   : > { %v185_v9 = vld [vmem:[%s170_s25 + $0x60] sm:$0xff]  ;;  %508 = vmatmul.msk.f32.vlgmr.msra.gmra.mxu2 %vm197_vm0, %v181_v8  ;;  %v186_v13 = vld [vmem:[%s170_s25 + $0x68] sm:$0xff]  ;;  %v187_v17 = vld [vmem:[%s170_s25 + $0x70] sm:$0xff]  ;;  %p602_p2 = scmp.lt.s32.totalorder %s600_s18, %s596_s8 }
  0x1a   : > { %v173_v10 = vld [vmem:[%s170_s25] sm:$0xff]  ;;  %512 = vmatmul.msk.f32.vlgmr.msra.gmra.mxu3 %vm197_vm0, %v185_v9  ;;  %v174_v14 = vld [vmem:[%s170_s25 + $0x8] sm:$0xff]  ;;  %v175_v18 = vld [vmem:[%s170_s25 + $0x10] sm:$0xff]  ;;  %p598_p13 = pnand %p597_p12, %p717_p4 }
  0x1b   : > { %v177_v11 = vld [vmem:[%s170_s25 + $0x20] sm:$0xff]  ;;  %500 = vmatmul.msk.f32.vlgmr.msra.gmra.mxu0 %vm197_vm0, %v173_v10  ;;  %v178_v15 = vld [vmem:[%s170_s25 + $0x28] sm:$0xff]  ;;  %v179_v19 = vld [vmem:[%s170_s25 + $0x30] sm:$0xff]  ;;  %p603_p3 = por %p602_p2, %p601_p1 }
  0x1c   : > { %504 = vmatmul.msk.f32.vlgmr.msra.gmra.mxu1 %vm197_vm0, %v177_v11  ;;  %v184_v20 = vld [vmem:[%s170_s25 + $0x58] sm:$0xff]  ;;  %p599_p0 = pneg %p598_p13 }
  0x1d   : > { %v188_v21 = vld [vmem:[%s170_s25 + $0x78] sm:$0xff] }
  0x1e   : > { %v176_v22 = vld [vmem:[%s170_s25 + $0x18] sm:$0xff]  ;;  %p604_p5 = pnand %p603_p3, %p599_p0 }
  0x1f   : > { %v180_v23 = vld [vmem:[%s170_s25 + $0x38] sm:$0xff] }
  0x21   : > { %509 = vmatmul.msk.f32.gmra.mxu2 %vm197_vm0, %v182_v12 }
  0x22   : > { %513 = vmatmul.msk.f32.gmra.mxu3 %vm197_vm0, %v186_v13 }
  0x23   : > { %501 = vmatmul.msk.f32.gmra.mxu0 %vm197_vm0, %v174_v14 }
  0x24   : > { %505 = vmatmul.msk.f32.gmra.mxu1 %vm197_vm0, %v178_v15 }
  0x29   : > { %510 = vmatmul.msk.f32.gmra.mxu2 %vm197_vm0, %v183_v16 }
  0x2a   : > { %514 = vmatmul.msk.f32.gmra.mxu3 %vm197_vm0, %v187_v17 }
  0x2b   : > { %502 = vmatmul.msk.f32.gmra.mxu0 %vm197_vm0, %v175_v18 }
  0x2c   : > { %506 = vmatmul.msk.f32.gmra.mxu1 %vm197_vm0, %v179_v19 }
  0x31   : > { %511 = vmatmul.msk.f32.gmra.mxu2 %vm197_vm0, %v184_v20 }
  0x32   : > { %515 = vmatmul.msk.f32.gmra.mxu3 %vm197_vm0, %v188_v21 }
  0x33   : > { %503 = vmatmul.msk.f32.gmra.mxu0 %vm197_vm0, %v176_v22 }
  0x34   : > { %507 = vmatmul.msk.f32.gmra.mxu1 %vm197_vm0, %v180_v23 }
  0x98   : > { %v227_v24 = vpop.f32.mrf.mxu0 }
  0x99   : > { %v268_v25 = vpop.f32.mrf.mxu1  ;;  %v363_v26 = vsel %vm362_vm1, %v227_v24, 0.0 }
  0x9a   : > { %v364_v27 = vsel %vm362_vm1, %v268_v25, 0.0 }
  0x9b   : > { %v365_v28 = vadd.f32 %v364_v27, %v363_v26 }
  0x9c   : > { %v309_v29 = vpop.f32.mrf.mxu2 }
  0x9d   : > { %v350_v30 = vpop.f32.mrf.mxu3  ;;  %v366_v31 = vsel %vm362_vm1, %v309_v29, 0.0 }
  0x9e   : > { %v368_v32 = vsel %vm362_vm1, %v350_v30, 0.0  ;;  %v367_v33 = vadd.f32 %v366_v31, %v365_v28 }
  0xa0   : > { %v230_v34 = vpop.f32.mrf.mxu0  ;;  %v369_v36 = vadd.f32 %v368_v32, %v367_v33 }
  0xa1   : > { %v271_v35 = vpop.f32.mrf.mxu1  ;;  %v370_v37 = vsel %vm362_vm1, %v230_v34, 0.0 }
  0xa2   : > { %v371_v38 = vsel %vm362_vm1, %v271_v35, 0.0  ;;  %391 = vst.msk [vmem:[%s786_s28] sm:$0xff] %vm362_vm1, %v369_v36 }
  0xa3   : > { %v372_v39 = vadd.f32 %v371_v38, %v370_v37 }
  0xa4   : > { %v312_v40 = vpop.f32.mrf.mxu2 }
  0xa5   : > { %v353_v41 = vpop.f32.mrf.mxu3  ;;  %v373_v42 = vsel %vm362_vm1, %v312_v40, 0.0 }
  0xa6   : > { %v375_v43 = vsel %vm362_vm1, %v353_v41, 0.0  ;;  %v374_v44 = vadd.f32 %v373_v42, %v372_v39 }
  0xa8   : > { %v233_v45 = vpop.f32.mrf.mxu0  ;;  %v376_v47 = vadd.f32 %v375_v43, %v374_v44 }
  0xa9   : > { %v274_v46 = vpop.f32.mrf.mxu1  ;;  %v377_v48 = vsel %vm362_vm1, %v233_v45, 0.0 }
  0xaa   : > { %v378_v49 = vsel %vm362_vm1, %v274_v46, 0.0  ;;  %392 = vst.msk [vmem:[%s786_s28 + $0x8] sm:$0xff] %vm362_vm1, %v376_v47 }
  0xab   : > { %v379_v50 = vadd.f32 %v378_v49, %v377_v48 }
  0xac   : > { %v315_v51 = vpop.f32.mrf.mxu2 }
  0xad   : > { %v356_v52 = vpop.f32.mrf.mxu3  ;;  %v380_v53 = vsel %vm362_vm1, %v315_v51, 0.0 }
  0xae   : > { %v382_v54 = vsel %vm362_vm1, %v356_v52, 0.0  ;;  %v381_v55 = vadd.f32 %v380_v53, %v379_v50 }
  0xb0   : > { %v236_v56 = vpop.f32.mrf.mxu0  ;;  %v383_v58 = vadd.f32 %v382_v54, %v381_v55 }
  0xb1   : > { %v277_v57 = vpop.f32.mrf.mxu1  ;;  %v384_v59 = vsel %vm362_vm1, %v236_v56, 0.0 }
  0xb2   : > { %v385_v60 = vsel %vm362_vm1, %v277_v57, 0.0  ;;  %393 = vst.msk [vmem:[%s786_s28 + $0x10] sm:$0xff] %vm362_vm1, %v383_v58 }
  0xb3   : > { %v386_v61 = vadd.f32 %v385_v60, %v384_v59 }
  0xb4   : > { %v318_v62 = vpop.f32.mrf.mxu2 }
  0xb5   : > { %v359_v63 = vpop.f32.mrf.mxu3  ;;  %v387_v0 = vsel %vm362_vm1, %v318_v62, 0.0 }
  0xb6   : > { %v389_v1 = vsel %vm362_vm1, %v359_v63, 0.0  ;;  %v388_v2 = vadd.f32 %v387_v0, %v386_v61 }
  0xb8   : > { %v390_v3 = vadd.f32 %v389_v1, %v388_v2 }
  0xba   : > { %394 = vst.msk [vmem:[%s786_s28 + $0x18] sm:$0xff] %vm362_vm1, %v390_v3 }
  0xbb   : > { %607 = shalt.err (!%p604_p5)
}
  0xbc   : > { %s660_s24 = smov 128   ;;  %s661_s25 = smov 8  }
  0xbd   : > { %523 = dma.vmem_to_hbm [thread:$0]  (%p717_p4), %s411_s5, 512, %s413_s12, %s396_s6, %s660_s24, %s660_s24, %s661_s25  }
  0xbe PF: > { %p529_p6 = scmp.ge.s32.totalorder %s658_s14, 2  ;;  %s427_s26 = sand.u32 1, %s638_s9  }
  0xbf   : > { %s428_s27 = scalar_lea.sflag [#allocation3], %s427_s26 }
  0xc0   : > { %p526_p7 = pnand %p529_p6, %p724_p8 }
  0xc2   : > { %p527_p9 = pneg %p526_p7 }
  0xc4   : > { %633 = dma.done.wait (%p527_p9), %s428_s27, 512  }
  0xc5   : > { %635 = vsyncadd (%p527_p9), %s428_s27, 4294966784  ;;  %s15_s14 = sadd.s32 1, %s658_s14   ;;  %s850_s9 = smov %s642_s10 }
  0xc6   : > { %p12_p10 = scmp.ge.s32.totalorder %s15_s14, 4   ;;  %s851_s10 = smov %s646_s11 }
  0xc7   : > { %s852_s11 = smov %s730_s22  ;;  %s853_s12 = smov %s654_s13 }
  0xc8   : > { %s854_s13 = smov %s856_s17  ;;  %14 = sbr.rel (!%p12_p10) target bundleno = 4 (0x4), region = 63 }
  0xcd   :  { %434 = vsyncpa [#allocation3], 1 }
  0xce   :  { %436 = vsyncpa [#allocation3 + $0x1], 1 }

</bundles_post_ra>
